<compile_context>
chip_gen: v5e
topology: v5e:2x2
jax: 0.10.0
libtpu: 0.0.40
codegen_flags: <defaults>
</compile_context>

<pallas_src>
import math

import jax
import jax.numpy as jnp
from jax.experimental import pallas as pl
from jax.experimental.pallas import tpu as pltpu


def _round_up(v, m):
    return ((v + m - 1) // m) * m


def _pick_tile(total, *, cap, unit=128, min_tiles=1):
    """Largest multiple-of-`unit` divisor of `total` that is <= cap, preferring
    choices giving at least `min_tiles` grid tiles (feeds both v7x cores)."""
    units = total // unit
    cands = [d * unit for d in range(1, units + 1)
             if units % d == 0 and d * unit <= cap]
    good = [c for c in cands if total // c >= min_tiles]
    return max(good) if good else max(cands)


def _support_kernel(x_ref, w_ref, o_ref):
    # support tile = x[i-tile] @ w[:, j-tile]; K = f_in is small, one MXU shot.
    o_ref[...] = jnp.dot(x_ref[...], w_ref[...],
                         preferred_element_type=jnp.float32).astype(o_ref.dtype)


def _aggregate_kernel(adj_ref, s_ref, b_ref, o_ref, acc_ref):
    k = pl.program_id(2)

    @pl.when(k == 0)
    def _init():
        acc_ref[...] = jnp.zeros_like(acc_ref)

    acc_ref[...] += jnp.dot(adj_ref[...], s_ref[...],
                            preferred_element_type=jnp.float32)

    @pl.when(k == pl.num_programs(2) - 1)
    def _finalize():
        o_ref[...] = (acc_ref[...] + b_ref[...]).astype(o_ref.dtype)


def ugs_graph_convolution(x, adj, weight, weight_mask_train, weight_mask_fixed,
                          bias=None, *, max_node_tile=512, max_fout_tile=512,
                          use_bf16=False, adj_buffer_count=2):
    """x: [N, F_in], adj: [N, N], weight/masks: [F_in, F_out], bias: [F_out] -> [N, F_out]."""
    n, f_in = x.shape
    f_out = weight.shape[1]
    out_dtype = x.dtype

    # ---- shapes / tiles -------------------------------------------------
    n_pad = _round_up(n, 128)          # minimal 128-alignment only (no lcm inflation)
    f_in_pad = _round_up(f_in, 8)      # F_in kept fully resident (small for GCN)
    f_out_pad0 = _round_up(f_out, 128)
    tn = f_out_pad0 if f_out_pad0 <= max_fout_tile else max_fout_tile
    f_out_pad = _round_up(f_out_pad0, tn)
    # tm prefers >=2 row tiles (v7x megacore); tk maximizes MXU contraction depth.
    # Both are divisors of n_pad, so no extra padding beyond 128-alignment.
    tm = _pick_tile(n_pad, cap=max_node_tile, min_tiles=2)
    tk = _pick_tile(n_pad, cap=max_node_tile, min_tiles=1)

    mxu_dtype = jnp.bfloat16 if use_bf16 else jnp.float32

    def pad2(a, rows, cols):
        return jnp.pad(a, ((0, rows - a.shape[0]), (0, cols - a.shape[1])))

    # Fold both masks into the weight on the wrapper side (tiny [F_in, F_out]
    # elementwise op that fuses with the pad copy) -> one weight stream.
    w_eff = weight * weight_mask_train * weight_mask_fixed

    x_p = pad2(x, n_pad, f_in_pad)
    w_p = pad2(w_eff, f_in_pad, f_out_pad)
    adj_p = pad2(adj.astype(mxu_dtype), n_pad, n_pad)
    if bias is None:
        b_p = jnp.zeros((1, f_out_pad), dtype=jnp.float32)
    else:
        b_p = pad2(bias.reshape(1, f_out).astype(jnp.float32), 1, f_out_pad)

    # ---- stage 1: support = x @ (weight * masks), computed exactly once ----
    support = pl.pallas_call(
        _support_kernel,
        out_shape=jax.ShapeDtypeStruct((n_pad, f_out_pad), mxu_dtype),
        grid_spec=pltpu.PrefetchScalarGridSpec(
            num_scalar_prefetch=0,
            grid=(n_pad // tm, f_out_pad // tn),
            in_specs=[
                pl.BlockSpec((tm, f_in_pad), lambda i, j: (i, 0)),   # x
                pl.BlockSpec((f_in_pad, tn), lambda i, j: (0, j)),   # masked weight
            ],
            out_specs=pl.BlockSpec((tm, tn), lambda i, j: (i, j)),
        ),
        compiler_params=pltpu.CompilerParams(
            dimension_semantics=("parallel", "parallel")),
        cost_estimate=pl.CostEstimate(
            flops=2 * n_pad * f_in_pad * f_out_pad, transcendentals=0,
            bytes_accessed=4 * (n_pad * f_in_pad + f_in_pad * f_out_pad)
            + n_pad * f_out_pad * jnp.dtype(mxu_dtype).itemsize),
    )(x_p, w_p)

    # ---- stage 2: out = adj @ support + bias ------------------------------
    grid = (n_pad // tm, f_out_pad // tn, n_pad // tk)
    i_tiles, j_tiles = grid[0], grid[1]
    adj_bytes = jnp.dtype(mxu_dtype).itemsize
    out_bytes = jnp.dtype(out_dtype).itemsize

    adj_spec_kwargs = {}
    if adj_buffer_count != 2:          # sweepable pipeline depth on the adj stream
        adj_spec_kwargs["pipeline_mode"] = pl.Buffered(adj_buffer_count)

    # VMEM working set (pipelined buffers + scratch) + headroom, kept well under
    # v7x's 64 MiB/TC budget (v5e/v6e have 128 MiB but tighter default limits).
    need = (max(adj_buffer_count, 2) * tm * tk * adj_bytes   # adj buffers
            + 2 * tk * tn * adj_bytes                        # support buffers
            + 2 * tm * tn * out_bytes                        # output buffers
            + tm * tn * 4                                    # f32 accumulator
            + 2 * tn * 4)                                    # bias
    vmem_limit = int(min(max(need + (16 << 20), 32 << 20), 48 << 20))

    flops = 2 * n_pad * n_pad * f_out_pad
    bytes_accessed = (j_tiles * n_pad * n_pad * adj_bytes          # adj, re-read per j tile
                      + i_tiles * n_pad * f_out_pad * adj_bytes    # support, re-read per i tile
                      + n_pad * f_out_pad * out_bytes              # output
                      + f_out_pad * 4)                             # bias

    out_p = pl.pallas_call(
        _aggregate_kernel,
        out_shape=jax.ShapeDtypeStruct((n_pad, f_out_pad), out_dtype),
        grid_spec=pltpu.PrefetchScalarGridSpec(
            num_scalar_prefetch=0,
            grid=grid,
            in_specs=[
                pl.BlockSpec((tm, tk), lambda i, j, k: (i, k), **adj_spec_kwargs),  # adj
                pl.BlockSpec((tk, tn), lambda i, j, k: (k, j)),                     # support
                pl.BlockSpec((1, tn), lambda i, j, k: (0, j)),                      # bias
            ],
            out_specs=pl.BlockSpec((tm, tn), lambda i, j, k: (i, j)),
            scratch_shapes=[pltpu.VMEM((tm, tn), jnp.float32)],   # f32 accumulator
        ),
        compiler_params=pltpu.CompilerParams(
            dimension_semantics=("parallel", "parallel", "arbitrary"),
            vmem_limit_bytes=vmem_limit),
        cost_estimate=pl.CostEstimate(flops=flops, transcendentals=0,
                                      bytes_accessed=bytes_accessed),
    )(adj_p, support, b_p)

    return out_p[:n, :f_out]


def reference(x, adj, weight, mt, mf, bias):
    w = weight * mt * mf
    return adj @ (x @ w) + bias[None, :]


if __name__ == "__main__":
    key = jax.random.PRNGKey(0)

    def make_inputs(k, n, f_in, f_out):
        kx, ka, kw, kmt, kmf, kb = jax.random.split(k, 6)
        x = jax.random.normal(kx, (n, f_in), dtype=jnp.float32)
        # Symmetric, row-normalized dense adjacency with self loops.
        a = (jax.random.uniform(ka, (n, n)) > 0.5).astype(jnp.float32)
        a = jnp.maximum(a, a.T) + jnp.eye(n, dtype=jnp.float32)
        deg = jnp.sum(a, axis=1, keepdims=True)
        adj = a / deg
        # reset_parameters-style init: uniform(-stdv, stdv), stdv = 1/sqrt(F_out).
        stdv = 1.0 / math.sqrt(f_out)
        weight = jax.random.uniform(kw, (f_in, f_out), minval=-stdv, maxval=stdv,
                                    dtype=jnp.float32)
        mt = jax.random.uniform(kmt, (f_in, f_out), minval=0.0, maxval=1.0,
                                dtype=jnp.float32)
        mf = (jax.random.uniform(kmf, (f_in, f_out)) > 0.2).astype(jnp.float32)
        bias = jax.random.uniform(kb, (f_out,), minval=-stdv, maxval=stdv,
                                  dtype=jnp.float32)
        return x, adj, weight, mt, mf, bias

    k1, k2 = jax.random.split(key)

    # (1) tiny shape from the module spec; (2) a multi-tile shape exercising the
    #     padded (i, j, k) grid and k-accumulation path (N=300 -> n_pad=384).
    for kk, n, f_in, f_out in [(k1, 8, 32, 32), (k2, 300, 48, 96)]:
        x, adj, weight, mt, mf, bias = make_inputs(kk, n, f_in, f_out)
        out = ugs_graph_convolution(x, adj, weight, mt, mf, bias)
        out = jax.block_until_ready(out)
        ref = reference(x, adj, weight, mt, mf, bias)
        assert out.shape == (n, f_out)
        assert jnp.allclose(out, ref, atol=1e-4, rtol=1e-4), f"mismatch vs reference (N={n})"

    # bf16 adj/support path (halves the dominant HBM stream); documented with a
    # looser tolerance since inputs are rounded to bf16 (f32 accumulation kept).
    x, adj, weight, mt, mf, bias = make_inputs(k2, 300, 48, 96)
    out_bf16 = jax.block_until_ready(
        ugs_graph_convolution(x, adj, weight, mt, mf, bias, use_bf16=True))
    ref = reference(x, adj, weight, mt, mf, bias)
    assert jnp.allclose(out_bf16, ref, atol=2e-2, rtol=2e-2), "bf16 path mismatch"

    print("KERNEL_OK")
</pallas_src>

<mosaic_0001>
module attributes {stable_mosaic.version = 11 : i64} {
  func.func @_support_kernel(%arg0: i32, %arg1: i32, %arg2: memref<128x32xf32, #tpu.memory_space<vmem>>, %arg3: memref<32x128xf32, #tpu.memory_space<vmem>>, %arg4: memref<128x128xf32, #tpu.memory_space<vmem>>) attributes {dimension_semantics = [#tpu.dimension_semantics<parallel>, #tpu.dimension_semantics<parallel>], iteration_bounds = array<i64: 1, 1>, scalar_prefetch = 0 : i64, scratch_operands = 0 : i64, tpu.core_type = #tpu.core_type<tc>, window_params = [{transform_indices = @transform_0, window_bounds = array<i64: 128, 32>}, {transform_indices = @transform_1, window_bounds = array<i64: 32, 128>}, {transform_indices = @transform_2, window_bounds = array<i64: 128, 128>}]} {
    %c0 = arith.constant 0 : index
    %c0_0 = arith.constant 0 : index
    %0 = vector.load %arg2[%c0, %c0_0] : memref<128x32xf32, #tpu.memory_space<vmem>>, vector<128x32xf32>
    %c0_1 = arith.constant 0 : index
    %c0_2 = arith.constant 0 : index
    %1 = vector.load %arg3[%c0_1, %c0_2] : memref<32x128xf32, #tpu.memory_space<vmem>>, vector<32x128xf32>
    %cst = arith.constant dense<0.000000e+00> : vector<128x128xf32>
    %2 = tpu.matmul %0, %1, %cst {dimension_numbers = #tpu.dot_dimension_numbers<[1], [0], [0], [1], [0, 0, 1, 1], [], []>} : vector<128x32xf32>, vector<32x128xf32>, vector<128x128xf32> -> vector<128x128xf32>
    %c0_3 = arith.constant 0 : index
    %c0_4 = arith.constant 0 : index
    %3 = vector.load %arg4[%c0_3, %c0_4] : memref<128x128xf32, #tpu.memory_space<vmem>>, vector<128x128xf32>
    tpu.vector_store %arg4[%c0_3, %c0_4], %2 {strides = array<i32>} : memref<128x128xf32, #tpu.memory_space<vmem>>, vector<128x128xf32>,
    return
  }
  func.func @transform_0(%arg0: i32, %arg1: i32) -> (i32, i32) {
    %c0_i32 = arith.constant 0 : i32
    %c0_i32_0 = arith.constant 0 : i32
    return %arg0, %c0_i32 : i32, i32
  }
  func.func @transform_1(%arg0: i32, %arg1: i32) -> (i32, i32) {
    %c0_i32 = arith.constant 0 : i32
    %c0_i32_0 = arith.constant 0 : i32
    return %c0_i32, %arg1 : i32, i32
  }
  func.func @transform_2(%arg0: i32, %arg1: i32) -> (i32, i32) {
    %c0_i32 = arith.constant 0 : i32
    return %arg0, %arg1 : i32, i32
  }
}

</mosaic_0001>

<bundles_post_ra>
// kernel: tpu_custom_call.1
= control target key start
LH: loop header
LB: loop body
LE: loop exit
PB: predicated region body
PF: predicated region fallthrough
CT: control target
= control target key end

     0   :  { %vm32_vm0 = vcmask 261120   ;;  %s334_s0 = inlined_call_operand.vmem [shape: f32[128,32], index: 0, kind: input, shape index: {}]   ;;  %s335_s1 = inlined_call_operand.vmem [shape: f32[32,128], index: 1, kind: input, shape index: {}]   ;;  %s336_s2 = inlined_call_operand.hbm [shape: f32[128,128], index: 2, kind: output, shape index: {}]  }
   0x1   :  { %v31_v0 = vld [vmem:[%s335_s1 + $0x18] sm:$0xff]  ;;  %v30_v1 = vld [vmem:[%s335_s1 + $0x10] sm:$0xff]  ;;  %v29_v2 = vld [vmem:[%s335_s1 + $0x8] sm:$0xff] }
   0x2   :  { %197 = vmatpush.msra.mxu2 %v31_v0  ;;  %198 = vmatpush.msra.mxu3 %v31_v0  ;;  %v28_v3 = vld [vmem:[%s335_s1] sm:$0xff] }
   0x3   :  { %93 = vmatpush.msra.mxu0 %v31_v0  ;;  %196 = vmatpush.msra.mxu1 %v31_v0  ;;  %v20_v4 = vld [vmem:[%s334_s0 + $0x40] sm:$0xff] }
   0x4   :  { %200 = vmatpush.msra.mxu2 %v30_v1  ;;  %201 = vmatpush.msra.mxu3 %v30_v1  ;;  %v24_v5 = vld [vmem:[%s334_s0 + $0x60] sm:$0xff] }
   0x5   :  { %94 = vmatpush.msra.mxu0 %v30_v1  ;;  %199 = vmatpush.msra.mxu1 %v30_v1 }
   0x6   :  { %203 = vmatpush.msra.mxu2 %v29_v2  ;;  %204 = vmatpush.msra.mxu3 %v29_v2 }
   0x7   :  { %95 = vmatpush.msra.mxu0 %v29_v2  ;;  %202 = vmatpush.msra.mxu1 %v29_v2 }
   0x8   :  { %7 = vsyncpa [#allocation3], 0  ;;  %206 = vmatpush.msra.mxu2 %v28_v3  ;;  %207 = vmatpush.msra.mxu3 %v28_v3  ;;  %v12_v6 = vld [vmem:[%s334_s0] sm:$0xff]  ;;  %v21_v8 = vld [vmem:[%s334_s0 + $0x48] sm:$0xff]  ;;  %s168_s22 = sshll.u32 %s336_s2, 4  ;;  %s238_s23 = smov 128   ;;  %s169_s22 = int_to_ptr.hbm [resolvable:$true] %s168_s22 }
   0x9   :  { %v16_v7 = vld [vmem:[%s334_s0 + $0x20] sm:$0xff]  ;;  %188 = vmatmul.msk.f32.vlgmr.msra.gmra.mxu2 %vm32_vm0, %v20_v4  ;;  %192 = vmatmul.msk.f32.vlgmr.msra.gmra.mxu3 %vm32_vm0, %v24_v5  ;;  %v25_v9 = vld [vmem:[%s334_s0 + $0x68] sm:$0xff]  ;;  %v22_v12 = vld [vmem:[%s334_s0 + $0x50] sm:$0xff]  ;;  %s239_s24 = smov 8  }
   0xa   :  { %96 = vmatpush.msra.mxu0 %v28_v3  ;;  %205 = vmatpush.msra.mxu1 %v28_v3  ;;  %v13_v10 = vld [vmem:[%s334_s0 + $0x8] sm:$0xff]  ;;  %v26_v13 = vld [vmem:[%s334_s0 + $0x70] sm:$0xff]  ;;  %v23_v16 = vld [vmem:[%s334_s0 + $0x58] sm:$0xff] }
   0xb   :  { %180 = vmatmul.msk.f32.vlgmr.msra.gmra.mxu0 %vm32_vm0, %v12_v6  ;;  %184 = vmatmul.msk.f32.vlgmr.msra.gmra.mxu1 %vm32_vm0, %v16_v7  ;;  %v17_v11 = vld [vmem:[%s334_s0 + $0x28] sm:$0xff]  ;;  %v14_v14 = vld [vmem:[%s334_s0 + $0x10] sm:$0xff]  ;;  %v27_v17 = vld [vmem:[%s334_s0 + $0x78] sm:$0xff] }
   0xc   :  { %v18_v15 = vld [vmem:[%s334_s0 + $0x30] sm:$0xff]  ;;  %v15_v18 = vld [vmem:[%s334_s0 + $0x18] sm:$0xff] }
   0xd   :  { %v19_v19 = vld [vmem:[%s334_s0 + $0x38] sm:$0xff]  ;;  %s237_s0 = smov [#allocation2]  }
   0xe   :  { %s166_s20 = sshll.u32 %s237_s0, 4  ;;  %s167_s20 = int_to_ptr.vmem [resolvable:$true] %s166_s20 }
  0x11   :  { %189 = vmatmul.msk.f32.gmra.mxu2 %vm32_vm0, %v21_v8  ;;  %193 = vmatmul.msk.f32.gmra.mxu3 %vm32_vm0, %v25_v9 }
  0x13   :  { %181 = vmatmul.msk.f32.gmra.mxu0 %vm32_vm0, %v13_v10  ;;  %185 = vmatmul.msk.f32.gmra.mxu1 %vm32_vm0, %v17_v11 }
  0x19   :  { %190 = vmatmul.msk.f32.gmra.mxu2 %vm32_vm0, %v22_v12  ;;  %194 = vmatmul.msk.f32.gmra.mxu3 %vm32_vm0, %v26_v13 }
  0x1b   :  { %182 = vmatmul.msk.f32.gmra.mxu0 %vm32_vm0, %v14_v14  ;;  %186 = vmatmul.msk.f32.gmra.mxu1 %vm32_vm0, %v18_v15 }
  0x21   :  { %191 = vmatmul.msk.f32.gmra.mxu2 %vm32_vm0, %v23_v16  ;;  %195 = vmatmul.msk.f32.gmra.mxu3 %vm32_vm0, %v27_v17 }
  0x23   :  { %183 = vmatmul.msk.f32.gmra.mxu0 %vm32_vm0, %v15_v18  ;;  %187 = vmatmul.msk.f32.gmra.mxu1 %vm32_vm0, %v19_v19 }
  0x88   :  { %v98_v20 = vpop.f32.mrf.mxu0  ;;  %v110_v21 = vpop.f32.mrf.mxu1 }
  0x89   :  { %146 = vst [vmem:[#allocation2] sm:$0xff] %v98_v20 }
  0x8a   :  { %150 = vst [vmem:[#allocation2 + $0x20] sm:$0xff] %v110_v21 }
  0x8c   :  { %v122_v22 = vpop.f32.mrf.mxu2  ;;  %v134_v23 = vpop.f32.mrf.mxu3 }
  0x8d   :  { %154 = vst [vmem:[#allocation2 + $0x40] sm:$0xff] %v122_v22 }
  0x8e   :  { %158 = vst [vmem:[#allocation2 + $0x60] sm:$0xff] %v134_v23 }
  0x90   :  { %v101_v24 = vpop.f32.mrf.mxu0  ;;  %v113_v25 = vpop.f32.mrf.mxu1 }
  0x91   :  { %147 = vst [vmem:[#allocation2 + $0x8] sm:$0xff] %v101_v24 }
  0x92   :  { %151 = vst [vmem:[#allocation2 + $0x28] sm:$0xff] %v113_v25 }
  0x94   :  { %v125_v26 = vpop.f32.mrf.mxu2  ;;  %v137_v27 = vpop.f32.mrf.mxu3 }
  0x95   :  { %155 = vst [vmem:[#allocation2 + $0x48] sm:$0xff] %v125_v26 }
  0x96   :  { %159 = vst [vmem:[#allocation2 + $0x68] sm:$0xff] %v137_v27 }
  0x98   :  { %v104_v28 = vpop.f32.mrf.mxu0  ;;  %v116_v29 = vpop.f32.mrf.mxu1 }
  0x99   :  { %148 = vst [vmem:[#allocation2 + $0x10] sm:$0xff] %v104_v28 }
  0x9a   :  { %152 = vst [vmem:[#allocation2 + $0x30] sm:$0xff] %v116_v29 }
  0x9c   :  { %v128_v30 = vpop.f32.mrf.mxu2  ;;  %v140_v31 = vpop.f32.mrf.mxu3 }
  0x9d   :  { %156 = vst [vmem:[#allocation2 + $0x50] sm:$0xff] %v128_v30 }
  0x9e   :  { %160 = vst [vmem:[#allocation2 + $0x70] sm:$0xff] %v140_v31 }
  0xa0   :  { %v107_v32 = vpop.f32.mrf.mxu0  ;;  %v119_v33 = vpop.f32.mrf.mxu1 }
  0xa1   :  { %149 = vst [vmem:[#allocation2 + $0x18] sm:$0xff] %v107_v32 }
  0xa2   :  { %153 = vst [vmem:[#allocation2 + $0x38] sm:$0xff] %v119_v33 }
  0xa4   :  { %v131_v34 = vpop.f32.mrf.mxu2  ;;  %v143_v35 = vpop.f32.mrf.mxu3 }
  0xa5   :  { %157 = vst [vmem:[#allocation2 + $0x58] sm:$0xff] %v131_v34 }
  0xa6   :  { %161 = vst [vmem:[#allocation2 + $0x78] sm:$0xff] %v143_v35 }
  0xa7   :  { %174 = dma.vmem_to_hbm [thread:$0]  %s167_s20, 2048, %s169_s22, [#allocation3], %s238_s23, %s238_s23, %s239_s24  }
  0xa8   :  { %235 = dma.done.wait [#allocation3], 2048  }
  0xa9   :  { %236 = vsyncadd [#allocation3], 4294965248 }
  0xaa   :  { %179 = vsyncpa [#allocation3], 1 }

</bundles_post_ra>
